<compile_context>
chip_gen: v6e
topology: v6e:2x2x1
jax: 0.10.0
libtpu: 0.0.40
codegen_flags: <defaults>
</compile_context>

<pallas_src>
import jax
import jax.numpy as jnp
from jax.experimental import pallas as pl
from jax.experimental.pallas import tpu as pltpu


def identity(x: jnp.ndarray) -> jnp.ndarray:
    """Identity forward pass (module semantics): zero cost, no kernel, no copy."""
    return x


# ---------------------------------------------------------------------------
# Variant 1 (preferred when a fresh buffer is required): direct HBM->HBM DMA.
# ---------------------------------------------------------------------------
def _dma_copy_kernel(x_hbm_ref, o_hbm_ref, sem):
    cp = pltpu.make_async_copy(x_hbm_ref, o_hbm_ref, sem)
    cp.start()
    cp.wait()


def identity_copy(x: jnp.ndarray) -> jnp.ndarray:
    """Identity that materializes a fresh output buffer via one HBM->HBM DMA."""
    if x.size == 0:
        return x
    nbytes = 2 * x.size * x.dtype.itemsize  # read + write: true HBM floor
    return pl.pallas_call(
        _dma_copy_kernel,
        out_shape=jax.ShapeDtypeStruct(x.shape, x.dtype),
        in_specs=[pl.BlockSpec(memory_space=pl.ANY)],
        out_specs=pl.BlockSpec(memory_space=pl.ANY),
        scratch_shapes=[pltpu.SemaphoreType.DMA(())],
        cost_estimate=pl.CostEstimate(
            flops=0, transcendentals=0, bytes_accessed=nbytes),
    )(x)


# ---------------------------------------------------------------------------
# Variant 2: VMEM-staged, BlockSpec-pipelined streaming copy.
# ---------------------------------------------------------------------------
def _copy_kernel(x_ref, o_ref):
    # Straight copy of the current VMEM tile (full-width, unmasked stores when
    # the lane dim is a multiple of 128).
    o_ref[...] = x_ref[...]


_BLOCK_BYTES = 4 * 1024 * 1024      # ~4 MiB/block -> per-step overhead < 5% of DMA
_MAX_LANE_WIDTH = 2048              # divisor-search upper bound for lane width
_VMEM_LIMIT = 32 * 1024 * 1024      # 4 x 4 MiB double buffers + headroom, all gens


def _pick_lane_width(n: int, trailing: int) -> int:
    """Largest divisor of n that is a multiple of 128 (lane-dense fast path)."""
    for cand in range(_MAX_LANE_WIDTH, 127, -128):
        if n % cand == 0:
            return cand
    # Irregular element count: keep the trailing dim (correct; possibly masked
    # stores, but full-extent last dim so the BlockSpec is always legal).
    return max(1, trailing)


def _sublane_pack(itemsize: int) -> int:
    """Native sublane packing: 8 for 32-bit, 16 for bf16/f16, 32 for int8/fp8."""
    return max(8, 32 // max(1, itemsize))


def _pick_block_rows(r: int, c: int, itemsize: int) -> int:
    """Row-block sized ~_BLOCK_BYTES, rounded to sublane packing, divisor of r."""
    if r * c * itemsize <= _BLOCK_BYTES:
        return r                                   # full extent (always legal)
    pack = _sublane_pack(itemsize)
    target = (_BLOCK_BYTES // (c * itemsize)) // pack * pack
    target = max(pack, min(target, r))
    # Prefer a block_rows that evenly divides r (avoids a padded edge block).
    br = target
    while br >= pack:
        if r % br == 0:
            return br
        br -= pack
    return target


def identity_copy_pipelined(x: jnp.ndarray) -> jnp.ndarray:
    """Identity copy via a lane-dense, double-buffered BlockSpec pipeline."""
    orig_shape = x.shape
    dtype = x.dtype
    n = x.size
    if n == 0:
        return x

    trailing = orig_shape[-1] if x.ndim >= 1 else 1
    c = _pick_lane_width(n, trailing)
    r = n // c
    x2 = x.reshape(r, c)

    itemsize = x2.dtype.itemsize
    block_rows = _pick_block_rows(r, c, itemsize)
    grid = (pl.cdiv(r, block_rows),)

    out2 = pl.pallas_call(
        _copy_kernel,
        out_shape=jax.ShapeDtypeStruct((r, c), dtype),
        grid=grid,
        in_specs=[pl.BlockSpec((block_rows, c), lambda i: (i, 0))],
        out_specs=pl.BlockSpec((block_rows, c), lambda i: (i, 0)),
        compiler_params=pltpu.CompilerParams(
            # Independent blocks: 'parallel' lets v7x shard the grid across both
            # TensorCores (neutral on single-TC v5e/v6e).
            dimension_semantics=("parallel",),
            # Keep the deep 4-buffer pipeline even on v5e's 16 MiB scoped default.
            vmem_limit_bytes=_VMEM_LIMIT,
        ),
        cost_estimate=pl.CostEstimate(
            flops=0, transcendentals=0, bytes_accessed=2 * n * itemsize),
    )(x2)

    return out2.reshape(orig_shape)


if __name__ == "__main__":
    key = jax.random.PRNGKey(0)
    k1, k2, k3 = jax.random.split(key, 3)

    # Small NCHW input consistent with a vision feature extractor.
    x = jax.random.normal(k1, (2, 4, 16, 16), dtype=jnp.float32)

    # 1) Module forward: metadata-only identity (no kernel, no copy).
    y = identity(x)
    jax.block_until_ready(y)
    assert y.shape == x.shape and y.dtype == x.dtype
    assert bool(jnp.array_equal(y, x))

    # 2) Direct HBM->HBM DMA copy (fresh output buffer, zero VMEM staging).
    y2 = identity_copy(x)
    jax.block_until_ready(y2)
    assert y2.shape == x.shape and y2.dtype == x.dtype
    assert bool(jnp.array_equal(y2, x))

    # 3) Pipelined VMEM-staged copy on the same input.
    y3 = identity_copy_pipelined(x)
    jax.block_until_ready(y3)
    assert y3.shape == x.shape and y3.dtype == x.dtype
    assert bool(jnp.array_equal(y3, x))

    # 4) bf16 input: exercises dtype-aware sublane packing in the pipelined path.
    x_bf16 = jax.random.normal(k2, (2, 4, 16, 16), dtype=jnp.bfloat16)
    y4 = identity_copy(x_bf16)
    y5 = identity_copy_pipelined(x_bf16)
    jax.block_until_ready((y4, y5))
    assert y4.dtype == jnp.bfloat16 and y5.dtype == jnp.bfloat16
    assert bool(jnp.array_equal(y4, x_bf16)) and bool(jnp.array_equal(y5, x_bf16))

    # 5) Irregular element count: exercises the non-128-divisible fallback path.
    x_odd = jax.random.normal(k3, (2, 3, 5, 7), dtype=jnp.float32)
    y6 = identity_copy(x_odd)
    y7 = identity_copy_pipelined(x_odd)
    jax.block_until_ready((y6, y7))
    assert bool(jnp.array_equal(y6, x_odd)) and bool(jnp.array_equal(y7, x_odd))

    print("KERNEL_OK")
</pallas_src>

<mosaic_0001>
module attributes {stable_mosaic.version = 11 : i64} {
  func.func @_dma_copy_kernel(%arg0: memref<2x4x16x16xf32, #tpu.memory_space<any>>, %arg1: memref<2x4x16x16xf32, #tpu.memory_space<any>>, %arg2: memref<!tpu.dma_semaphore, #tpu.memory_space<semaphore_mem>>) attributes {dimension_semantics = [], scalar_prefetch = 0 : i64, scratch_operands = 1 : i64, tpu.core_type = #tpu.core_type<tc>} {
    tpu.enqueue_dma source(%arg0 : memref<2x4x16x16xf32, #tpu.memory_space<any>>) target(%arg1 : memref<2x4x16x16xf32, #tpu.memory_space<any>>) target_semaphore(%arg2 : memref<!tpu.dma_semaphore, #tpu.memory_space<semaphore_mem>>)
    tpu.wait_dma2 semaphore(%arg2 : memref<!tpu.dma_semaphore, #tpu.memory_space<semaphore_mem>>) src(%arg0 : memref<2x4x16x16xf32, #tpu.memory_space<any>>) dst(%arg1 : memref<2x4x16x16xf32, #tpu.memory_space<any>>)
    return
  }
}

</mosaic_0001>

<bundles_post_ra>
// kernel: tpu_custom_call.1
= control target key start
LH: loop header
LB: loop body
LE: loop exit
PB: predicated region body
PF: predicated region fallthrough
CT: control target
= control target key end

     0   :  { %s30_s6 = smov [#allocation2]   ;;  %s31_s7 = smov 131072   ;;  %s49_s0 = inlined_call_operand.hbm [shape: f32[2,4,16,16], index: 0, kind: input, shape index: {}]   ;;  %s50_s1 = inlined_call_operand.hbm [shape: f32[2,4,16,16], index: 1, kind: output, shape index: {}]  }
   0x1   :  { %s32_s8 = smov 0  }
   0x2   :  { %12 = dma.general %s49_s0, 2048, %s50_s1, %s30_s6, %s31_s7, [#allocation4], %s32_s8, 0  }
   0x3   :  { %28 = dma.done.wait [#allocation2], 2048 }
   0x4   :  { %29 = vsyncadd [#allocation2], 4294965248 }
   0x5   :  { %18 = vsyncmov [#allocation2] }
   0x8   :  { %s19_s13 = vpop.sfrf %18 }
   0x9   :  { %p24_p0 = scmp.ne.s32.totalorder %s19_s13, 0 }
   0xb   :  { %23 = shalt.err (%p24_p0)  }

</bundles_post_ra>
